<compile_context>
chip_gen: v6e
topology: v6e:2x2x1
jax: 0.10.0
libtpu: 0.0.40
codegen_flags: <defaults>
</compile_context>

<pallas_src>
import functools

import jax
import jax.numpy as jnp
from jax.experimental import pallas as pl
from jax.experimental.pallas import tpu as pltpu

N_ACTIONS = 10
# TODO(synk): N_STATES comes from a CSV (EPI_FILE.columns.size - N_ACTIONS - 1)
# which is not available in-script; 32 is used as a stand-in.
N_STATES = 32
HIDDEN = 50

HIDDEN_PAD = 128      # lane-dense hidden width
OUT_PAD = 128         # lane-dense output width
TILE_B_DEFAULT = 1024  # perf review: 256 -> 1024 (HBM/overhead-bound kernel)
_TILE_MULT = 16        # sublane multiple that is safe for bf16-packed tiles


def _round_up(x, m):
    return ((x + m - 1) // m) * m


def _net_kernel(x_ref, w1_ref, b1_ref, w2_ref, b2_ref, out_ref):
    # fc1: bf16 MXU matmul ([tb, N_STATES] @ [N_STATES, HIDDEN_PAD]), f32 acc.
    h = jnp.dot(x_ref[...], w1_ref[...], preferred_element_type=jnp.float32)
    # Epilogue stays f32 (v5e VPU has no native bf16 elementwise).
    h = jnp.maximum(h + b1_ref[...], 0.0)
    # out: bf16 MXU matmul ([tb, HIDDEN_PAD] @ [HIDDEN_PAD, OUT_PAD]), f32 acc.
    y = jnp.dot(h.astype(jnp.bfloat16), w2_ref[...],
                preferred_element_type=jnp.float32)
    out_ref[...] = (y + b2_ref[...]).astype(out_ref.dtype)


def prepare_params(w1, b1, w2, b2):
    """One-time prep (NOT in the per-call path): transpose to [K, N] layout,
    zero-pad lane dims to 128, and cast matmul operands to bf16. Biases stay
    f32 for the f32 VPU epilogue. PyTorch layout in: w1 [HIDDEN, N_STATES],
    w2 [N_ACTIONS, HIDDEN]."""
    w1_t = jnp.zeros((N_STATES, HIDDEN_PAD), jnp.float32)
    w1_t = w1_t.at[:, :HIDDEN].set(jnp.transpose(w1).astype(jnp.float32))
    b1_p = jnp.zeros((1, HIDDEN_PAD), jnp.float32).at[:, :HIDDEN].set(
        b1.astype(jnp.float32)[None, :])
    w2_t = jnp.zeros((HIDDEN_PAD, OUT_PAD), jnp.float32)
    w2_t = w2_t.at[:HIDDEN, :N_ACTIONS].set(jnp.transpose(w2).astype(jnp.float32))
    b2_p = jnp.zeros((1, OUT_PAD), jnp.float32).at[:, :N_ACTIONS].set(
        b2.astype(jnp.float32)[None, :])
    return (w1_t.astype(jnp.bfloat16), b1_p,
            w2_t.astype(jnp.bfloat16), b2_p)


def _choose_tiling(B, tile_b):
    """Balanced tiles (minimal padding), multiple of 16 rows, and >=2 grid
    steps when B > 512 so v7x's two TensorCores both get work."""
    n_tiles = pl.cdiv(B, tile_b)
    if n_tiles == 1 and B > 512:
        n_tiles = 2
    tb = _round_up(pl.cdiv(B, n_tiles), _TILE_MULT)
    return tb, n_tiles * tb, n_tiles


@functools.partial(jax.jit, static_argnames=("tile_b", "out_dtype"))
def net_forward_padded(x, params, *, tile_b=TILE_B_DEFAULT,
                       out_dtype=jnp.float32):
    """Returns the padded [b_pad, OUT_PAD] Q-value slab (rows >= B and lanes
    >= N_ACTIONS are exact zeros). Prefer consuming this directly (e.g. fuse
    the DQN argmax downstream, masking lanes >= N_ACTIONS to -inf) to avoid a
    re-materializing slice. out_dtype=jnp.bfloat16 halves HBM writeback."""
    w1_t, b1_p, w2_t, b2_p = params
    B = x.shape[0]
    x = x.astype(jnp.bfloat16)          # halve the x HBM read stream

    tb, b_pad, n_tiles = _choose_tiling(B, tile_b)
    if b_pad != B:
        x = jnp.pad(x, ((0, b_pad - B), (0, 0)))

    out = pl.pallas_call(
        _net_kernel,
        out_shape=jax.ShapeDtypeStruct((b_pad, OUT_PAD), out_dtype),
        grid=(n_tiles,),
        in_specs=[
            # x tiles stream through VMEM, double-buffered.
            # (If an xprof trace shows exposed input DMA, add
            #  pipeline_mode=pl.Buffered(3) to this spec only.)
            pl.BlockSpec((tb, N_STATES), lambda i: (i, 0)),
            # Weights/biases: same block every step -> VMEM-resident.
            pl.BlockSpec((N_STATES, HIDDEN_PAD), lambda i: (0, 0)),
            pl.BlockSpec((1, HIDDEN_PAD), lambda i: (0, 0)),
            pl.BlockSpec((HIDDEN_PAD, OUT_PAD), lambda i: (0, 0)),
            pl.BlockSpec((1, OUT_PAD), lambda i: (0, 0)),
        ],
        out_specs=pl.BlockSpec((tb, OUT_PAD), lambda i: (i, 0)),
        compiler_params=pltpu.CompilerParams(
            dimension_semantics=("parallel",),   # megacore sharding on v7x
            vmem_limit_bytes=32 * 1024 * 1024,
        ),
    )(x, w1_t, b1_p, w2_t, b2_p)
    return out


def net_forward(x, params, *, tile_b=TILE_B_DEFAULT):
    """PyTorch-compatible entry point: x [B, N_STATES] -> [B, N_ACTIONS] f32.
    (The trailing slice is a separate XLA op; bandwidth-critical consumers
    should use net_forward_padded and read the padded slab directly.)"""
    out = net_forward_padded(x, params, tile_b=tile_b, out_dtype=jnp.float32)
    return out[:x.shape[0], :N_ACTIONS]


def init_params(key):
    k1, k2, k3, k4 = jax.random.split(key, 4)
    # weight.data.normal_(0, 0.1) as in the PyTorch module
    w1 = 0.1 * jax.random.normal(k1, (HIDDEN, N_STATES), dtype=jnp.float32)
    w2 = 0.1 * jax.random.normal(k2, (N_ACTIONS, HIDDEN), dtype=jnp.float32)
    # PyTorch Linear default bias init: uniform(-1/sqrt(fan_in), 1/sqrt(fan_in))
    bound1 = 1.0 / jnp.sqrt(jnp.float32(N_STATES))
    bound2 = 1.0 / jnp.sqrt(jnp.float32(HIDDEN))
    b1 = jax.random.uniform(k3, (HIDDEN,), minval=-bound1, maxval=bound1,
                            dtype=jnp.float32)
    b2 = jax.random.uniform(k4, (N_ACTIONS,), minval=-bound2, maxval=bound2,
                            dtype=jnp.float32)
    return w1, b1, w2, b2


if __name__ == "__main__":
    key = jax.random.PRNGKey(0)
    kx, kx2, kp = jax.random.split(key, 3)
    w1, b1, w2, b2 = init_params(kp)
    params = prepare_params(w1, b1, w2, b2)   # one-time prep

    def ref_fn(x):
        return jnp.maximum(x @ w1.T + b1, 0.0) @ w2.T + b2

    # bf16 matmul operands with f32 accumulation -> loose-ish tolerance vs f32 ref.
    TOL = dict(atol=3e-2, rtol=3e-2)

    # Small batch (single tile)
    B = 8
    x = jax.random.normal(kx, (B, N_STATES), dtype=jnp.float32)
    out = jax.block_until_ready(net_forward(x, params))
    assert out.shape == (B, N_ACTIONS)
    assert jnp.allclose(out, ref_fn(x), **TOL)

    # Larger batch exercising balanced tiling (B=300 pads to 304, not 512)
    B2 = 300
    x2 = jax.random.normal(kx2, (B2, N_STATES), dtype=jnp.float32)
    out2 = jax.block_until_ready(net_forward(x2, params))
    assert out2.shape == (B2, N_ACTIONS)
    assert jnp.allclose(out2, ref_fn(x2), **TOL)

    # Padded bf16-output path (half writeback; consume padded slab directly)
    out3 = jax.block_until_ready(
        net_forward_padded(x2, params, out_dtype=jnp.bfloat16))
    assert out3.shape[1] == OUT_PAD and out3.shape[0] >= B2
    assert jnp.allclose(out3[:B2, :N_ACTIONS].astype(jnp.float32),
                        ref_fn(x2), atol=5e-2, rtol=5e-2)

    print("KERNEL_OK")
</pallas_src>

<mosaic_0001>
module attributes {stable_mosaic.version = 11 : i64} {
  func.func @_net_kernel(%arg0: i32, %arg1: memref<16x32xbf16, #tpu.memory_space<vmem>>, %arg2: memref<32x128xbf16, #tpu.memory_space<vmem>>, %arg3: memref<1x128xf32, #tpu.memory_space<vmem>>, %arg4: memref<128x128xbf16, #tpu.memory_space<vmem>>, %arg5: memref<1x128xf32, #tpu.memory_space<vmem>>, %arg6: memref<16x128xf32, #tpu.memory_space<vmem>>) attributes {dimension_semantics = [#tpu.dimension_semantics<parallel>], iteration_bounds = array<i64: 1>, scalar_prefetch = 0 : i64, scratch_operands = 0 : i64, tpu.core_type = #tpu.core_type<tc>, window_params = [{transform_indices = @transform_0, window_bounds = array<i64: 16, 32>}, {pipeline_mode = #tpu.pipeline_mode<synchronous>, transform_indices = @transform_1, window_bounds = array<i64: 32, 128>}, {pipeline_mode = #tpu.pipeline_mode<synchronous>, transform_indices = @transform_2, window_bounds = array<i64: 1, 128>}, {pipeline_mode = #tpu.pipeline_mode<synchronous>, transform_indices = @transform_3, window_bounds = array<i64: 128, 128>}, {pipeline_mode = #tpu.pipeline_mode<synchronous>, transform_indices = @transform_4, window_bounds = array<i64: 1, 128>}, {transform_indices = @transform_5, window_bounds = array<i64: 16, 128>}]} {
    %c0 = arith.constant 0 : index
    %c0_0 = arith.constant 0 : index
    %0 = vector.load %arg1[%c0, %c0_0] : memref<16x32xbf16, #tpu.memory_space<vmem>>, vector<16x32xbf16>
    %c0_1 = arith.constant 0 : index
    %c0_2 = arith.constant 0 : index
    %1 = vector.load %arg2[%c0_1, %c0_2] : memref<32x128xbf16, #tpu.memory_space<vmem>>, vector<32x128xbf16>
    %cst = arith.constant dense<0.000000e+00> : vector<16x128xf32>
    %2 = tpu.matmul %0, %1, %cst {dimension_numbers = #tpu.dot_dimension_numbers<[1], [0], [0], [1], [0, 0, 1, 1], [], []>} : vector<16x32xbf16>, vector<32x128xbf16>, vector<16x128xf32> -> vector<16x128xf32>
    %c0_3 = arith.constant 0 : index
    %c0_4 = arith.constant 0 : index
    %3 = vector.load %arg3[%c0_3, %c0_4] : memref<1x128xf32, #tpu.memory_space<vmem>>, vector<1x128xf32>
    %4 = vector.broadcast %3 : vector<1x128xf32> to vector<16x128xf32>
    %5 = arith.addf %2, %4 : vector<16x128xf32>
    %cst_5 = arith.constant 0.000000e+00 : f32
    %6 = vector.broadcast %cst_5 : f32 to vector<16x128xf32>
    %7 = arith.maximumf %5, %6 : vector<16x128xf32>
    %8 = arith.truncf %7 : vector<16x128xf32> to vector<16x128xbf16>
    %c0_6 = arith.constant 0 : index
    %c0_7 = arith.constant 0 : index
    %9 = vector.load %arg4[%c0_6, %c0_7] : memref<128x128xbf16, #tpu.memory_space<vmem>>, vector<128x128xbf16>
    %cst_8 = arith.constant dense<0.000000e+00> : vector<16x128xf32>
    %10 = tpu.matmul %8, %9, %cst_8 {dimension_numbers = #tpu.dot_dimension_numbers<[1], [0], [0], [1], [0, 0, 1, 1], [], []>} : vector<16x128xbf16>, vector<128x128xbf16>, vector<16x128xf32> -> vector<16x128xf32>
    %c0_9 = arith.constant 0 : index
    %c0_10 = arith.constant 0 : index
    %11 = vector.load %arg5[%c0_9, %c0_10] : memref<1x128xf32, #tpu.memory_space<vmem>>, vector<1x128xf32>
    %12 = vector.broadcast %11 : vector<1x128xf32> to vector<16x128xf32>
    %13 = arith.addf %10, %12 : vector<16x128xf32>
    %c0_11 = arith.constant 0 : index
    %c0_12 = arith.constant 0 : index
    %14 = vector.load %arg6[%c0_11, %c0_12] : memref<16x128xf32, #tpu.memory_space<vmem>>, vector<16x128xf32>
    tpu.vector_store %arg6[%c0_11, %c0_12], %13 {strides = array<i32>} : memref<16x128xf32, #tpu.memory_space<vmem>>, vector<16x128xf32>,
    return
  }
  func.func @transform_0(%arg0: i32) -> (i32, i32) {
    %c0_i32 = arith.constant 0 : i32
    %c0_i32_0 = arith.constant 0 : i32
    return %arg0, %c0_i32 : i32, i32
  }
  func.func @transform_1(%arg0: i32) -> (i32, i32) {
    %c0_i32 = arith.constant 0 : i32
    %c0_i32_0 = arith.constant 0 : i32
    %c0_i32_1 = arith.constant 0 : i32
    return %c0_i32, %c0_i32_0 : i32, i32
  }
  func.func @transform_2(%arg0: i32) -> (i32, i32) {
    %c0_i32 = arith.constant 0 : i32
    %c0_i32_0 = arith.constant 0 : i32
    %c0_i32_1 = arith.constant 0 : i32
    return %c0_i32, %c0_i32_0 : i32, i32
  }
  func.func @transform_3(%arg0: i32) -> (i32, i32) {
    %c0_i32 = arith.constant 0 : i32
    %c0_i32_0 = arith.constant 0 : i32
    %c0_i32_1 = arith.constant 0 : i32
    return %c0_i32, %c0_i32_0 : i32, i32
  }
  func.func @transform_4(%arg0: i32) -> (i32, i32) {
    %c0_i32 = arith.constant 0 : i32
    %c0_i32_0 = arith.constant 0 : i32
    %c0_i32_1 = arith.constant 0 : i32
    return %c0_i32, %c0_i32_0 : i32, i32
  }
  func.func @transform_5(%arg0: i32) -> (i32, i32) {
    %c0_i32 = arith.constant 0 : i32
    %c0_i32_0 = arith.constant 0 : i32
    return %arg0, %c0_i32 : i32, i32
  }
}

</mosaic_0001>

<bundles_post_ra>
// kernel: net_forward_padded.1
= control target key start
LH: loop header
LB: loop body
LE: loop exit
PB: predicated region body
PF: predicated region fallthrough
CT: control target
= control target key end

     0   :  { %10 = vsyncpa [#allocation3], 0  ;;  %s421_s0 = inlined_call_operand.vmem [shape: bf16[16,32], index: 0, kind: input, shape index: {}]   ;;  %s422_s1 = inlined_call_operand.vmem [shape: bf16[32,128], index: 1, kind: input, shape index: {}]   ;;  %s423_s2 = inlined_call_operand.vmem [shape: f32[1,128], index: 2, kind: input, shape index: {}]   ;;  %s424_s3 = inlined_call_operand.hbm [shape: bf16[128,128], index: 3, kind: input, shape index: {}]   ;;  %s425_s4 = inlined_call_operand.vmem [shape: f32[1,128], index: 4, kind: input, shape index: {}]   ;;  %s426_s5 = inlined_call_operand.hbm [shape: f32[16,128], index: 5, kind: output, shape index: {}]  }
   0x1   :  { %11 = vsyncpa [#allocation4], 0  ;;  %s362_s18 = smov [#allocation2]  }
   0x2   :  { %s23_s19 = sshll.u32 %s362_s18, 4  ;;  %s24_s19 = int_to_ptr.vmem [resolvable:$true] %s23_s19 }
   0x3   :  { %s326_s20 = scalar_lea.vmem %s24_s19, 1024  ;;  %p331_p1 = scmp.lt.s32.totalorder %s24_s19, %s24_s19 }
   0x4   :  { %p327_p0 = scmp.ne.s32.totalorder %s24_s19, %s326_s20  ;;  %p332_p2 = scmp.lt.s32.totalorder %s326_s20, %s326_s20 }
   0x6   :  { %p333_p3 = por %p332_p2, %p331_p1 }
   0x8   :  { %p334_p4 = pnand %p333_p3, %p327_p0 }
   0xa   :  { %337 = shalt.err (!%p334_p4)
}
   0xb   :  { %s363_s21 = smov 64   ;;  %s364_s22 = smov 4  }
   0xc   :  { %29 = dma.hbm_to_vmem [thread:$0]  %s424_s3, 1024, %s24_s19, [#allocation3], %s363_s21, %s363_s21, %s364_s22  }
   0xd   :  { %358 = dma.done.wait [#allocation3], 1024  }
   0xe   :  { %359 = vsyncadd [#allocation3], 4294966272  ;;  %v365_v0 = vmov 0.0   ;;  %vm366_vm0 = vmmov 0   ;;  %v307_v1 = vld [vmem:[%s422_s1 + $0x8] sm:$0xff]   ;;  %v308_v2 = vld [vmem:[%s422_s1] sm:$0xff]  }
   0xf   :  { %271 = vmatprep.subr.bf16.mxu0 %v365_v0  ;;  %275 = vmatprep.mubr.msk.bf16.mxu0 %vm366_vm0, %v365_v0  ;;  %v310_v3 = vld [vmem:[#allocation2 + $0x38] sm:$0xff]   ;;  %v309_v4 = vld [vmem:[%s421_s0] sm:$0xff]   ;;  %v311_v5 = vld [vmem:[#allocation2 + $0x30] sm:$0xff]   ;;  %vm66_vm1 = vcmask 261120   ;;  %s367_s7 = smov [#allocation5]  }
  0x10   :  { %279 = vmatprep.subr.bf16.mxu1 %v365_v0  ;;  %295 = vmatprep.mubr.msk.bf16.mxu1 %vm366_vm0, %v365_v0  ;;  %v312_v6 = vld [vmem:[#allocation2 + $0x28] sm:$0xff]   ;;  %v313_v7 = vld [vmem:[#allocation2 + $0x20] sm:$0xff]   ;;  %v314_v8 = vld [vmem:[#allocation2 + $0x18] sm:$0xff]   ;;  %s233_s8 = sshll.u32 %s367_s7, 4  ;;  %s234_s8 = int_to_ptr.vmem [resolvable:$true] %s233_s8 }
  0x11   :  { %272 = vmatpush3.bf16.msra.mxu0 %v307_v1  ;;  %280 = vmatpush3.bf16.msra.mxu1 %v310_v3  ;;  %v315_v9 = vld [vmem:[#allocation2 + $0x10] sm:$0xff]   ;;  %v316_v10 = vld [vmem:[#allocation2 + $0x8] sm:$0xff]   ;;  %v317_v11 = vld [vmem:[#allocation2] sm:$0xff]   ;;  %p343_p6 = scmp.lt.s32.totalorder %s234_s8, %s234_s8 }
  0x12   :  { %273 = vmatprep.subr.bf16.mxu0 %v365_v0  ;;  %281 = vmatprep.subr.bf16.mxu1 %v365_v0  ;;  %v245_v12 = vld [vmem:[%s423_s2] ss:$0 sm:$0xff]  ;;  %s338_s2 = scalar_lea.vmem %s234_s8, 256 }
  0x13   :  { %v250_v22 = vld [vmem:[%s425_s4] ss:$0 sm:$0xff]  ;;  %p339_p5 = scmp.ne.s32.totalorder %s234_s8, %s338_s2  ;;  %p344_p7 = scmp.lt.s32.totalorder %s338_s2, %s338_s2 }
  0x15   :  { %274 = vmatpush3.bf16.msra.mxu0 %v308_v2  ;;  %282 = vmatpush3.bf16.msra.mxu1 %v311_v5  ;;  %p345_p8 = por %p344_p7, %p343_p6 }
  0x16   :  { %283 = vmatprep.subr.bf16.mxu1 %v365_v0 }
  0x17   :  { %p346_p9 = pnand %p345_p8, %p339_p5 }
  0x18   :  { %276 = vmatmul.mubr.msk.bf16.vlgmr.msra.gmra.mxu0 %vm66_vm1, %v309_v4 }
  0x19   :  { %284 = vmatpush3.bf16.msra.mxu1 %v312_v6 }
  0x1a   :  { %285 = vmatprep.subr.bf16.mxu1 %v365_v0 }
  0x1d   :  { %286 = vmatpush3.bf16.msra.mxu1 %v313_v7 }
  0x1e   :  { %287 = vmatprep.subr.bf16.mxu1 %v365_v0 }
  0x21   :  { %288 = vmatpush3.bf16.msra.mxu1 %v314_v8 }
  0x22   :  { %289 = vmatprep.subr.bf16.mxu1 %v365_v0 }
  0x25   :  { %290 = vmatpush3.bf16.msra.mxu1 %v315_v9 }
  0x26   :  { %291 = vmatprep.subr.bf16.mxu1 %v365_v0 }
  0x29   :  { %292 = vmatpush3.bf16.msra.mxu1 %v316_v10 }
  0x2a   :  { %293 = vmatprep.subr.bf16.mxu1 %v365_v0 }
  0x2d   :  { %294 = vmatpush3.bf16.msra.mxu1 %v317_v11 }
  0xd8   :  { %v104_v13 = vpop.f32.mrf.mxu0 }
  0xd9   :  { %v105_v15 = vadd.f32 %v245_v12, %v104_v13 }
  0xda   :  { %v277_v14 = vpop.f32.mrf.mxu0 }
  0xdb   :  { %v111_v19 = vmax.f32 %v105_v15, 0.0 }
  0xdc   :  { %v107_v16 = vpop.f32.mrf.mxu0 }
  0xdd   :  { %v108_v17 = vadd.f32 %v245_v12, %v107_v16 }
  0xde   :  { %v278_v18 = vpop.f32.mrf.mxu0 }
  0xdf   :  { %v112_v20 = vmax.f32 %v108_v17, 0.0 }
  0xe1   :  { %v113_v21 = vpack.c.bf16 %v112_v20, %v111_v19 }
  0xe3   :  { %296 = vmatmul.mubr.bf16.vlgmr.msra.gmra.mxu1 %v113_v21 }
 0x1a3   :  { %v219_v23 = vpop.f32.mrf.mxu1 }
 0x1a4   :  { %v220_v24 = vadd.f32 %v250_v22, %v219_v23 }
 0x1a5   :  { %v297_v25 = vpop.f32.mrf.mxu1 }
 0x1a6   :  { %226 = vst [vmem:[#allocation5] sm:$0xff] %v220_v24 }
 0x1a7   :  { %v222_v26 = vpop.f32.mrf.mxu1 }
 0x1a8   :  { %v223_v27 = vadd.f32 %v250_v22, %v222_v26 }
 0x1a9   :  { %v298_v28 = vpop.f32.mrf.mxu1 }
 0x1aa   :  { %227 = vst [vmem:[#allocation5 + $0x8] sm:$0xff] %v223_v27 }
 0x1ab   :  { %349 = shalt.err (!%p346_p9)
}
 0x1ac   :  { %s368_s9 = smov 128   ;;  %s369_s4 = smov 8  }
 0x1ad   :  { %239 = dma.vmem_to_hbm [thread:$0]  %s234_s8, 256, %s426_s5, [#allocation4], %s368_s9, %s368_s9, %s369_s4  }
 0x1ae   :  { %360 = dma.done.wait [#allocation4], 256  }
 0x1af   :  { %361 = vsyncadd [#allocation4], 4294967040 }
 0x1b0   :  { %243 = vsyncpa [#allocation3], 1 }
 0x1b1   :  { %244 = vsyncpa [#allocation4], 1 }

</bundles_post_ra>
